<compile_context>
chip_gen: v6e
topology: v6e:2x2x1
jax: 0.10.0
libtpu: 0.0.40
codegen_flags: <defaults>
</compile_context>

<pallas_src>
import math

import jax
import jax.numpy as jnp
from jax.experimental import pallas as pl
from jax.experimental.pallas import tpu as pltpu


# --------------------------------------------------------------------------- #
# Elementwise GELU (exact erf form, matching torch.nn.GELU() default)
# --------------------------------------------------------------------------- #
def _gelu_erf(x):
    """erf-based GELU via the Abramowitz & Stegun 7.1.26 polynomial.

    Only elementwise VPU/EUP ops; the divide is an approximate EUP reciprocal so
    it co-issues with the exp instead of expanding into a VALU divide sequence.
    """
    z = x * 0.7071067811865476            # x / sqrt(2)
    a = jnp.abs(z)
    t = pl.reciprocal(1.0 + 0.3275911 * a, approx=True)
    poly = t * (0.254829592 + t * (-0.284496736 + t * (1.421413741
             + t * (-1.453152027 + t * 1.061405429))))
    erf_abs = 1.0 - poly * jnp.exp(-a * a)
    erf = jnp.where(z < 0.0, -erf_abs, erf_abs)
    return 0.5 * x * (1.0 + erf)


def _fc_partial(x_ref, w1_ref, b1_ref, w2_ref):
    """(tm, C_in) @ (C_in, th) -> GELU -> @ (th, C_out); f32 accumulation."""
    h = jnp.dot(x_ref[...], w1_ref[...], preferred_element_type=jnp.float32)
    h = _gelu_erf(h + b1_ref[...].astype(jnp.float32))
    return jnp.dot(h.astype(w2_ref.dtype), w2_ref[...],
                   preferred_element_type=jnp.float32)


# --------------------------------------------------------------------------- #
# Kernels
# --------------------------------------------------------------------------- #
def mlp_kernel_fused(x_ref, w1_ref, b1_ref, w2_ref, b2_ref, out_ref):
    """Single hidden tile (grid = (row_tiles,)): no accumulator needed."""
    y = _fc_partial(x_ref, w1_ref, b1_ref, w2_ref)
    out_ref[...] = (y + b2_ref[...].astype(jnp.float32)).astype(out_ref.dtype)


def mlp_kernel_accum_out(x_ref, w1_ref, b1_ref, w2_ref, b2_ref, out_ref):
    """Hidden-tiled, f32 output: accumulate directly into the output block."""
    k = pl.program_id(1)

    @pl.when(k == 0)
    def _init():
        out_ref[...] = jnp.broadcast_to(
            b2_ref[...].astype(jnp.float32), out_ref.shape)

    out_ref[...] += _fc_partial(x_ref, w1_ref, b1_ref, w2_ref)


def mlp_kernel_scratch(x_ref, w1_ref, b1_ref, w2_ref, b2_ref, out_ref, acc_ref):
    """Hidden-tiled, narrow output dtype: f32 VMEM scratch accumulator."""
    k = pl.program_id(1)

    @pl.when(k == 0)
    def _init():
        acc_ref[...] = jnp.broadcast_to(
            b2_ref[...].astype(jnp.float32), acc_ref.shape)

    acc_ref[...] += _fc_partial(x_ref, w1_ref, b1_ref, w2_ref)

    @pl.when(k == pl.num_programs(1) - 1)
    def _finalize():
        out_ref[...] = acc_ref[...].astype(out_ref.dtype)


# --------------------------------------------------------------------------- #
# Tile selection helpers
# --------------------------------------------------------------------------- #
def _vmem_capacity_bytes():
    try:
        info = pltpu.get_tpu_info()
        cap = getattr(info, "vmem_capacity_bytes", None)
        if cap:
            return int(cap)
    except Exception:
        pass
    return 64 * 1024 * 1024  # conservative: v7x per-TC VMEM


def _largest_divisor(n, upper, multiple):
    """Largest d <= upper with n % d == 0 and (d % multiple == 0 or d == n)."""
    upper = max(1, min(int(upper), n))
    for d in range(upper, 0, -1):
        if n % d == 0 and (d % multiple == 0 or d == n):
            return d
    return n


def _pick_tm(m, block_m):
    """Row-tile size: as large as possible, but prefer >=2 tiles (2 TCs on v7x)."""
    tm = _largest_divisor(m, block_m, 8)
    if m // tm < 2:
        half = _largest_divisor(m, max(tm // 2, 1), 8)
        if half < tm and m // half >= 2:
            tm = half
    return tm


# --------------------------------------------------------------------------- #
# Wrapper
# --------------------------------------------------------------------------- #
def mlp_forward(x, w1, b1, w2, b2, *, block_m=None, block_h=None,
                compute_dtype=jnp.bfloat16, vmem_fraction=0.75):
    """y = fc2(GELU(fc1(x))).  Biases may be 1-D (torch style) or (1, n)."""
    *lead, c_in = x.shape
    hidden = w1.shape[-1]
    c_out = w2.shape[-1]
    m = math.prod(lead) if lead else 1

    out_dtype = x.dtype
    cd = jnp.dtype(compute_dtype) if compute_dtype is not None else jnp.dtype(x.dtype)

    xm = x.reshape(m, c_in).astype(cd)
    w1c = w1.astype(cd)
    w2c = w2.astype(cd)
    b1r = b1.reshape(1, hidden)
    b2r = b2.reshape(1, c_out)

    in_dsize = cd.itemsize
    out_dsize = jnp.dtype(out_dtype).itemsize
    b1_dsize = jnp.dtype(b1r.dtype).itemsize
    b2_dsize = jnp.dtype(b2r.dtype).itemsize

    capacity = _vmem_capacity_bytes()
    budget = int(capacity * vmem_fraction)

    if block_m is None:                       # dtype-aware default row tile
        block_m = 1024 if in_dsize <= 2 else 512

    def footprint(tm, th, use_scratch):
        fp = 2 * tm * c_in * in_dsize         # x tile (double-buffered)
        fp += 2 * c_in * th * in_dsize        # fc1 weight slab
        fp += 2 * th * b1_dsize               # fc1 bias slab
        fp += 2 * th * c_out * in_dsize       # fc2 weight slab
        fp += 2 * c_out * b2_dsize            # fc2 bias
        fp += 2 * tm * c_out * out_dsize      # output tile
        if use_scratch:
            fp += tm * c_out * 4              # f32 accumulator
        return fp

    tm = _pick_tm(m, block_m)

    # Collapse the hidden axis when the full weight slabs fit in the VMEM budget.
    fused = ((block_h is None or block_h >= hidden)
             and footprint(tm, hidden, False) <= budget)

    if fused:
        th = hidden
        use_scratch = False
    else:
        use_scratch = jnp.dtype(out_dtype) != jnp.dtype(jnp.float32)
        start_h = hidden if block_h is None else min(block_h, hidden)
        th = _largest_divisor(hidden, start_h, 128)
        while th > 128 and footprint(tm, th, use_scratch) > budget:
            new_th = _largest_divisor(hidden, max(th // 2, 1), 128)
            if new_th >= th:
                break
            th = new_th
        while tm > 8 and footprint(tm, th, use_scratch) > budget:
            new_tm = _largest_divisor(m, max(tm // 2, 1), 8)
            if new_tm >= tm:
                break
            tm = new_tm

    assert m % tm == 0 and hidden % th == 0, "tile selection must divide shapes"

    fp = footprint(tm, th, use_scratch)
    vmem_limit = int(min(capacity, max(fp + (16 << 20), 32 << 20)))

    cost = pl.CostEstimate(
        flops=2 * m * hidden * (c_in + c_out),
        transcendentals=m * hidden,
        bytes_accessed=(m * c_in * in_dsize + c_in * hidden * in_dsize
                        + hidden * c_out * in_dsize + hidden * b1_dsize
                        + c_out * b2_dsize + m * c_out * out_dsize))

    if fused:
        out = pl.pallas_call(
            mlp_kernel_fused,
            out_shape=jax.ShapeDtypeStruct((m, c_out), out_dtype),
            grid=(m // tm,),
            in_specs=[
                pl.BlockSpec((tm, c_in), lambda i: (i, 0)),        # x row tile
                pl.BlockSpec((c_in, hidden), lambda i: (0, 0)),    # fc1 weight
                pl.BlockSpec((1, hidden), lambda i: (0, 0)),       # fc1 bias
                pl.BlockSpec((hidden, c_out), lambda i: (0, 0)),   # fc2 weight
                pl.BlockSpec((1, c_out), lambda i: (0, 0)),        # fc2 bias
            ],
            out_specs=pl.BlockSpec((tm, c_out), lambda i: (i, 0)),
            compiler_params=pltpu.CompilerParams(
                dimension_semantics=("parallel",),
                vmem_limit_bytes=vmem_limit),
            cost_estimate=cost,
        )(xm, w1c, b1r, w2c, b2r)
    else:
        kernel = mlp_kernel_scratch if use_scratch else mlp_kernel_accum_out
        scratch = [pltpu.VMEM((tm, c_out), jnp.float32)] if use_scratch else []
        out = pl.pallas_call(
            kernel,
            out_shape=jax.ShapeDtypeStruct((m, c_out), out_dtype),
            grid=(m // tm, hidden // th),                 # hidden = fc2 contraction
            in_specs=[
                pl.BlockSpec((tm, c_in), lambda i, k: (i, 0)),     # x row tile
                pl.BlockSpec((c_in, th), lambda i, k: (0, k)),     # fc1 weight slab
                pl.BlockSpec((1, th), lambda i, k: (0, k)),        # fc1 bias slab
                pl.BlockSpec((th, c_out), lambda i, k: (k, 0)),    # fc2 weight slab
                pl.BlockSpec((1, c_out), lambda i, k: (0, 0)),     # fc2 bias
            ],
            out_specs=pl.BlockSpec((tm, c_out), lambda i, k: (i, 0)),
            scratch_shapes=scratch,
            compiler_params=pltpu.CompilerParams(
                dimension_semantics=("parallel", "arbitrary"),
                vmem_limit_bytes=vmem_limit),
            cost_estimate=cost,
        )(xm, w1c, b1r, w2c, b2r)

    return out.reshape(*lead, c_out)


def mlp_reference(x, w1, b1, w2, b2):
    """Pure-JAX reference mirroring the PyTorch forward (nn.GELU = exact erf)."""
    h = jnp.dot(x, w1, precision=jax.lax.Precision.HIGHEST) + b1
    h = jax.nn.gelu(h, approximate=False)
    return jnp.dot(h, w2, precision=jax.lax.Precision.HIGHEST) + b2


if __name__ == "__main__":
    # Small but lane-tile-friendly shapes (channel dims multiples of 128,
    # rows a multiple of 8) so every BlockSpec respects the (8, 128) rule.
    B, N = 2, 64
    C_IN, HID, C_OUT = 128, 256, 128

    key = jax.random.PRNGKey(0)
    k1, k2, k3, k4, k5 = jax.random.split(key, 5)
    x = jax.random.normal(k1, (B, N, C_IN), dtype=jnp.float32)
    w1 = jax.random.normal(k2, (C_IN, HID), dtype=jnp.float32) * 0.05
    b1 = jax.random.normal(k3, (HID,), dtype=jnp.float32) * 0.05
    w2 = jax.random.normal(k4, (HID, C_OUT), dtype=jnp.float32) * 0.05
    b2 = jax.random.normal(k5, (C_OUT,), dtype=jnp.float32) * 0.05

    ref = mlp_reference(x, w1, b1, w2, b2)

    def check(name, out, atol):
        out = jax.block_until_ready(out)
        assert out.shape == ref.shape, (name, out.shape, ref.shape)
        err = float(jnp.max(jnp.abs(out.astype(jnp.float32) - ref)))
        assert err < atol, f"{name}: max abs err {err} >= {atol}"

    # 1) Default path: bf16 MXU operands, hidden axis collapsed (fits VMEM budget).
    check("fused_bf16", mlp_forward(x, w1, b1, w2, b2), 2e-2)
    # 2) Hidden-tiled path, f32 output accumulated directly in the output block.
    check("tiled_bf16", mlp_forward(x, w1, b1, w2, b2, block_m=64, block_h=128), 2e-2)
    # 3) Hidden-tiled path in pure f32 (no operand down-cast), tighter tolerance.
    check("tiled_f32",
          mlp_forward(x, w1, b1, w2, b2, block_h=128, compute_dtype=None), 5e-3)
    # 4) bf16 inputs/outputs -> hidden-tiled path with the f32 scratch accumulator.
    check("tiled_bf16_out",
          mlp_forward(x.astype(jnp.bfloat16), w1.astype(jnp.bfloat16), b1,
                      w2.astype(jnp.bfloat16), b2, block_h=128), 3e-2)

    print("KERNEL_OK")
</pallas_src>

<mosaic_0001>
module attributes {stable_mosaic.version = 11 : i64} {
  func.func @mlp_kernel_fused(%arg0: i32, %arg1: memref<64x128xbf16, #tpu.memory_space<vmem>>, %arg2: memref<128x256xbf16, #tpu.memory_space<vmem>>, %arg3: memref<1x256xf32, #tpu.memory_space<vmem>>, %arg4: memref<256x128xbf16, #tpu.memory_space<vmem>>, %arg5: memref<1x128xf32, #tpu.memory_space<vmem>>, %arg6: memref<64x128xf32, #tpu.memory_space<vmem>>) attributes {dimension_semantics = [#tpu.dimension_semantics<parallel>], iteration_bounds = array<i64: 2>, scalar_prefetch = 0 : i64, scratch_operands = 0 : i64, tpu.core_type = #tpu.core_type<tc>, window_params = [{transform_indices = @transform_0, window_bounds = array<i64: 64, 128>}, {pipeline_mode = #tpu.pipeline_mode<synchronous>, transform_indices = @transform_1, window_bounds = array<i64: 128, 256>}, {pipeline_mode = #tpu.pipeline_mode<synchronous>, transform_indices = @transform_2, window_bounds = array<i64: 1, 256>}, {pipeline_mode = #tpu.pipeline_mode<synchronous>, transform_indices = @transform_3, window_bounds = array<i64: 256, 128>}, {pipeline_mode = #tpu.pipeline_mode<synchronous>, transform_indices = @transform_4, window_bounds = array<i64: 1, 128>}, {transform_indices = @transform_5, window_bounds = array<i64: 64, 128>}]} {
    %c0 = arith.constant 0 : index
    %c0_0 = arith.constant 0 : index
    %0 = vector.load %arg1[%c0, %c0_0] : memref<64x128xbf16, #tpu.memory_space<vmem>>, vector<64x128xbf16>
    %c0_1 = arith.constant 0 : index
    %c0_2 = arith.constant 0 : index
    %1 = vector.load %arg2[%c0_1, %c0_2] : memref<128x256xbf16, #tpu.memory_space<vmem>>, vector<128x256xbf16>
    %cst = arith.constant dense<0.000000e+00> : vector<64x256xf32>
    %2 = tpu.matmul %0, %1, %cst {dimension_numbers = #tpu.dot_dimension_numbers<[1], [0], [0], [1], [0, 0, 1, 1], [], []>} : vector<64x128xbf16>, vector<128x256xbf16>, vector<64x256xf32> -> vector<64x256xf32>
    %c0_3 = arith.constant 0 : index
    %c0_4 = arith.constant 0 : index
    %3 = vector.load %arg3[%c0_3, %c0_4] : memref<1x256xf32, #tpu.memory_space<vmem>>, vector<1x256xf32>
    %4 = vector.broadcast %3 : vector<1x256xf32> to vector<64x256xf32>
    %5 = arith.addf %2, %4 : vector<64x256xf32>
    %cst_5 = arith.constant 0.707106769 : f32
    %6 = vector.broadcast %cst_5 : f32 to vector<64x256xf32>
    %7 = arith.mulf %5, %6 : vector<64x256xf32>
    %8 = math.absf %7 : vector<64x256xf32>
    %cst_6 = arith.constant 0.327591091 : f32
    %9 = vector.broadcast %cst_6 : f32 to vector<64x256xf32>
    %10 = arith.mulf %9, %8 : vector<64x256xf32>
    %cst_7 = arith.constant 1.000000e+00 : f32
    %11 = vector.broadcast %cst_7 : f32 to vector<64x256xf32>
    %12 = arith.addf %11, %10 : vector<64x256xf32>
    %13 = tpu.reciprocal %12 {approx = true} : vector<64x256xf32> -> vector<64x256xf32>
    %cst_8 = arith.constant 1.06140542 : f32
    %14 = vector.broadcast %cst_8 : f32 to vector<64x256xf32>
    %15 = arith.mulf %13, %14 : vector<64x256xf32>
    %cst_9 = arith.constant -1.45315206 : f32
    %16 = vector.broadcast %cst_9 : f32 to vector<64x256xf32>
    %17 = arith.addf %16, %15 : vector<64x256xf32>
    %18 = arith.mulf %13, %17 : vector<64x256xf32>
    %cst_10 = arith.constant 1.42141378 : f32
    %19 = vector.broadcast %cst_10 : f32 to vector<64x256xf32>
    %20 = arith.addf %19, %18 : vector<64x256xf32>
    %21 = arith.mulf %13, %20 : vector<64x256xf32>
    %cst_11 = arith.constant -0.284496725 : f32
    %22 = vector.broadcast %cst_11 : f32 to vector<64x256xf32>
    %23 = arith.addf %22, %21 : vector<64x256xf32>
    %24 = arith.mulf %13, %23 : vector<64x256xf32>
    %cst_12 = arith.constant 0.254829586 : f32
    %25 = vector.broadcast %cst_12 : f32 to vector<64x256xf32>
    %26 = arith.addf %25, %24 : vector<64x256xf32>
    %27 = arith.mulf %13, %26 : vector<64x256xf32>
    %cst_13 = arith.constant 0.000000e+00 : f32
    %28 = vector.broadcast %cst_13 : f32 to vector<64x256xf32>
    %29 = arith.subf %28, %8 : vector<64x256xf32>
    %30 = arith.mulf %29, %8 : vector<64x256xf32>
    %31 = math.exp %30 : vector<64x256xf32>
    %32 = arith.mulf %27, %31 : vector<64x256xf32>
    %cst_14 = arith.constant 1.000000e+00 : f32
    %33 = vector.broadcast %cst_14 : f32 to vector<64x256xf32>
    %34 = arith.subf %33, %32 : vector<64x256xf32>
    %cst_15 = arith.constant 0.000000e+00 : f32
    %35 = vector.broadcast %cst_15 : f32 to vector<64x256xf32>
    %36 = arith.cmpf olt, %7, %35 : vector<64x256xf32>
    %cst_16 = arith.constant 0.000000e+00 : f32
    %37 = vector.broadcast %cst_16 : f32 to vector<64x256xf32>
    %38 = arith.subf %37, %34 : vector<64x256xf32>
    %39 = arith.select %36, %38, %34 : vector<64x256xi1>, vector<64x256xf32>
    %cst_17 = arith.constant 5.000000e-01 : f32
    %40 = vector.broadcast %cst_17 : f32 to vector<64x256xf32>
    %41 = arith.mulf %40, %5 : vector<64x256xf32>
    %cst_18 = arith.constant 1.000000e+00 : f32
    %42 = vector.broadcast %cst_18 : f32 to vector<64x256xf32>
    %43 = arith.addf %42, %39 : vector<64x256xf32>
    %44 = arith.mulf %41, %43 : vector<64x256xf32>
    %45 = arith.truncf %44 : vector<64x256xf32> to vector<64x256xbf16>
    %c0_19 = arith.constant 0 : index
    %c0_20 = arith.constant 0 : index
    %46 = vector.load %arg4[%c0_19, %c0_20] : memref<256x128xbf16, #tpu.memory_space<vmem>>, vector<256x128xbf16>
    %cst_21 = arith.constant dense<0.000000e+00> : vector<64x128xf32>
    %47 = tpu.matmul %45, %46, %cst_21 {dimension_numbers = #tpu.dot_dimension_numbers<[1], [0], [0], [1], [0, 0, 1, 1], [], []>} : vector<64x256xbf16>, vector<256x128xbf16>, vector<64x128xf32> -> vector<64x128xf32>
    %c0_22 = arith.constant 0 : index
    %c0_23 = arith.constant 0 : index
    %48 = vector.load %arg5[%c0_22, %c0_23] : memref<1x128xf32, #tpu.memory_space<vmem>>, vector<1x128xf32>
    %49 = vector.broadcast %48 : vector<1x128xf32> to vector<64x128xf32>
    %50 = arith.addf %47, %49 : vector<64x128xf32>
    %c0_24 = arith.constant 0 : index
    %c0_25 = arith.constant 0 : index
    %51 = vector.load %arg6[%c0_24, %c0_25] : memref<64x128xf32, #tpu.memory_space<vmem>>, vector<64x128xf32>
    tpu.vector_store %arg6[%c0_24, %c0_25], %50 {strides = array<i32>} : memref<64x128xf32, #tpu.memory_space<vmem>>, vector<64x128xf32>,
    return
  }
  func.func @transform_0(%arg0: i32) -> (i32, i32) {
    %c0_i32 = arith.constant 0 : i32
    %c0_i32_0 = arith.constant 0 : i32
    return %arg0, %c0_i32 : i32, i32
  }
  func.func @transform_1(%arg0: i32) -> (i32, i32) {
    %c0_i32 = arith.constant 0 : i32
    %c0_i32_0 = arith.constant 0 : i32
    %c0_i32_1 = arith.constant 0 : i32
    return %c0_i32, %c0_i32_0 : i32, i32
  }
  func.func @transform_2(%arg0: i32) -> (i32, i32) {
    %c0_i32 = arith.constant 0 : i32
    %c0_i32_0 = arith.constant 0 : i32
    %c0_i32_1 = arith.constant 0 : i32
    return %c0_i32, %c0_i32_0 : i32, i32
  }
  func.func @transform_3(%arg0: i32) -> (i32, i32) {
    %c0_i32 = arith.constant 0 : i32
    %c0_i32_0 = arith.constant 0 : i32
    %c0_i32_1 = arith.constant 0 : i32
    return %c0_i32, %c0_i32_0 : i32, i32
  }
  func.func @transform_4(%arg0: i32) -> (i32, i32) {
    %c0_i32 = arith.constant 0 : i32
    %c0_i32_0 = arith.constant 0 : i32
    %c0_i32_1 = arith.constant 0 : i32
    return %c0_i32, %c0_i32_0 : i32, i32
  }
  func.func @transform_5(%arg0: i32) -> (i32, i32) {
    %c0_i32 = arith.constant 0 : i32
    %c0_i32_0 = arith.constant 0 : i32
    return %arg0, %c0_i32 : i32, i32
  }
}

</mosaic_0001>

<bundles_post_ra>
// kernel: tpu_custom_call.1
= control target key start
LH: loop header
LB: loop body
LE: loop exit
PB: predicated region body
PF: predicated region fallthrough
CT: control target
= control target key end

     0   :  { %10 = vsyncpa [#allocation3], 0  ;;  %s2328_s0 = inlined_call_operand.hbm [shape: bf16[128,128], index: 0, kind: input, shape index: {}]   ;;  %s2329_s1 = inlined_call_operand.hbm [shape: bf16[128,256], index: 1, kind: input, shape index: {}]   ;;  %s2330_s2 = inlined_call_operand.vmem [shape: f32[1,256], index: 2, kind: input, shape index: {}]   ;;  %s2331_s3 = inlined_call_operand.hbm [shape: bf16[256,128], index: 3, kind: input, shape index: {}]   ;;  %s2332_s4 = inlined_call_operand.vmem [shape: f32[1,128], index: 4, kind: input, shape index: {}]   ;;  %s2333_s5 = inlined_call_operand.hbm [shape: f32[128,128], index: 5, kind: output, shape index: {}]  }
   0x1   :  { %12 = vsyncpa [#allocation3 + $0x1], 0 }
   0x2   :  { %13 = vsyncpa [#allocation6], 0 }
   0x3   :  { %14 = vsyncpa [#allocation4], 0 }
   0x4   :  { %16 = vsyncpa [#allocation4 + $0x1], 0  ;;  %s1696_s18 = smov 0   ;;  %s1698_s19 = smov 0  }
   0x5   :  { %s1700_s20 = smov 0   ;;  %s1702_s21 = smov 0  }
   0x6 LB: > { %s1717_s22 = sadd.s32 4294967295, %s1653_s21   ;;  %s1226_s23 = sadd.s32 4294967294, %s1653_s21   ;;  %s1653_s21 = sphi %s1702_s21, %s2389_s21   ;;  %s1649_s20 = sphi %s1700_s20, %s2388_s20   ;;  %s1645_s19 = sphi %s1698_s19, %s2387_s19   ;;  %s1641_s18 = sphi %s1696_s18, %s2386_s18  }
   0x7   : > { %p42_p0 = scmp.ne.s32.totalorder %s1645_s19, %s1641_s18  ;;  %p2334_p1 = scmp.eq.s32.totalorder %s1717_s22, 0 }
   0x8   : > { %p156_p3 = scmp.eq.s32.totalorder %s1226_s23, 1  ;;  %p1227_p5 = scmp.ge.s32.totalorder %s1653_s21, 1 }
   0x9   : > { %p1726_p4 = por %p2334_p1, %p42_p0  ;;  %p163_p7 = scmp.lt.s32.totalorder %s1653_s21, 3 }
   0xa   : > { %p1731_p6 = por %p156_p3, %p42_p0  ;;  %s1655_s27 = smov [#allocation5]  }
   0xb   : > { %s2350_s24 = scalar_select %p1726_p4, 1, 0 }
   0xc   : > { %s2351_s25 = scalar_select %p1731_p6, 1, 0 }
   0xd   : > { %p1736_p8 = pnand %p1227_p5, %p163_p7  ;;  %s175_s28 = sshll.u32 %s1655_s27, 4  ;;  %s176_s28 = int_to_ptr.vmem [resolvable:$true] %s175_s28 }
   0xe   : > { %s1656_s30 = smov [#allocation7]   ;;  %s1516_s7 = scalar_lea.vmem %s176_s28, 2048 }
   0xf   : > { %s2352_s26 = scalar_select %p1736_p8, 1, 0 }
  0x10   : > { %p1335_p9 = pneg %p1736_p8  ;;  %s191_s6 = sshll.u32 %s1656_s30, 4  ;;  %s192_s6 = int_to_ptr.vmem [resolvable:$true] %s191_s6 }
  0x11   : > { %p1517_p13 = scmp.ne.s32.totalorder %s176_s28, %s1516_s7  ;;  %p1524_p5 = scmp.lt.s32.totalorder %s176_s28, %s176_s28 }
  0x12   : > { %p1745_p11 = pnand %p1335_p9, %p2334_p1  ;;  %p1525_p7 = scmp.lt.s32.totalorder %s1516_s7, %s1516_s7 }
  0x14   : > { %p1507_p12 = pneg %p1745_p11  ;;  %p1526_p10 = por %p1525_p7, %p1524_p5 }
  0x16   : > { %p1519_p0 = pnand %p1517_p13, %p1507_p12 }
  0x18   : > { %p1520_p3 = pneg %p1519_p0 }
  0x1a   : > { %p1527_p9 = pnand %p1526_p10, %p1520_p3 }
  0x1c   : > { %1530 = shalt.err (!%p1527_p9)
}
  0x1d   : > { %s1657_s8 = smov 128   ;;  %s1658_s9 = smov 8  }
  0x1e   : > { %1338 = dma.hbm_to_vmem [thread:$0]  (!%p1745_p11), %s2329_s1, 2048, %s176_s28, [#allocation6], %s1657_s8, %s1657_s8, %s1658_s9  }
  0x1f   : > { %s1542_s12 = scalar_lea.vmem %s192_s6, 2048  ;;  %p1550_p2 = scmp.lt.s32.totalorder %s192_s6, %s192_s6 }
  0x20   : > { %p1543_p1 = scmp.ne.s32.totalorder %s192_s6, %s1542_s12  ;;  %p1551_p6 = scmp.lt.s32.totalorder %s1542_s12, %s1542_s12 }
  0x22   : > { %p1545_p13 = pnand %p1543_p1, %p1507_p12  ;;  %p1552_p5 = por %p1551_p6, %p1550_p2 }
  0x24   : > { %p1546_p0 = pneg %p1545_p13 }
  0x26   : > { %p1553_p10 = pnand %p1552_p5, %p1546_p0 }
  0x28   : > { %1556 = shalt.err (!%p1553_p10)
}
  0x29   : > { %s2335_s13 = smov 64   ;;  %s1660_s14 = smov 4  }
  0x2a   : > { %1341 = dma.hbm_to_vmem [thread:$0]  (!%p1745_p11), %s2331_s3, 2048, %s192_s6, [#allocation6], %s2335_s13, %s2335_s13, %s1660_s14  }
  0x2b   : > { %s1771_s17 = sadd.s32 1, %s1653_s21   ;;  %s29_s27 = sadd.s32 1, %s1649_s20 }
  0x2c   : > { %s26_s23 = ssub.s32 %s1653_s21, %s1771_s17  ;;  %p36_p2 = scmp.ne.s32.totalorder %s1649_s20, %s1645_s19 }
  0x2d   : > { %p27_p1 = scmp.eq.s32.totalorder %s26_s23, 0  ;;  %p37_p6 = scmp.eq.s32.totalorder %s1653_s21, 0 }
  0x2e   : > { %p2354_p3 = scmp.eq.s32.totalorder %s1717_s22, 1  ;;  %p1352_p9 = scmp.lt.s32.totalorder %s1653_s21, 2 }
  0x2f   : > { %s1780_s28 = scalar_select %p27_p1, %s1649_s20, %s29_s27  }
  0x30   : > { %p38_p12 = por %p37_p6, %p36_p2  ;;  %p1784_p7 = por %p2354_p3, %p36_p2 }
  0x31   : > { %s208_s30 = sand.u32 1, %s1649_s20   ;;  %s1281_s6 = sshll.u32 %s1653_s21, 9 }
  0x32   : > { %s2355_s29 = scalar_select %p1784_p7, 1, 0 }
  0x33   : > { %s1231_s7 = sshll.u32 %s208_s30, 5  ;;  %s1794_s10 = scalar_lea.hbm %s2328_s0, %s1281_s6 }
  0x34   : > { %s212_s11 = scalar_lea.vmem [#allocation2], %s1231_s7  ;;  %p1798_p11 = pnand %p1352_p9, %p38_p12 }
  0x35   : > { %s219_s12 = sshll.u32 %s212_s11, 4  ;;  %s1802_s16 = scalar_lea.sflag [#allocation3], %s208_s30  ;;  %s1796_s12 = int_to_ptr.vmem [resolvable:$true] %s219_s12 }
  0x36   : > { %s1557_s23 = scalar_lea.hbm %s1794_s10, 512  ;;  %p1559_p0 = pneg %p1798_p11 }
  0x37   : > { %p1558_p13 = scmp.ne.s32.totalorder %s1794_s10, %s1557_s23  ;;  %s1562_s7 = scalar_lea.hbm %s2328_s0, 1024 }
  0x38   : > { %p1563_p1 = scmp.lt.s32.totalorder %s1794_s10, %s2328_s0  ;;  %p1564_p2 = scmp.lt.s32.totalorder %s1562_s7, %s1557_s23 }
  0x39   : > { %p1560_p5 = pnand %p1559_p0, %p1558_p13 }
  0x3a   : > { %p1565_p6 = por %p1564_p2, %p1563_p1 }
  0x3b   : > { %p1561_p10 = pneg %p1560_p5 }
  0x3d   : > { %p1566_p12 = pnand %p1565_p6, %p1561_p10 }
  0x3f   : > { %1569 = shalt.err (!%p1566_p12)
}
  0x40   : > { %s1570_s30 = scalar_lea.vmem %s1796_s12, 512  ;;  %s1661_s11 = smov [#allocation2]  }
  0x41   : > { %p1571_p3 = scmp.ne.s32.totalorder %s1796_s12, %s1570_s30  ;;  %s1575_s13 = sshll.u32 %s1661_s11, 4  ;;  %s1576_s13 = int_to_ptr.vmem [resolvable:$false] %s1575_s13 }
  0x42   : > { %s1577_s27 = scalar_lea.vmem %s1576_s13, 1024  ;;  %p1578_p5 = scmp.lt.s32.totalorder %s1796_s12, %s1576_s13 }
  0x43   : > { %p1573_p9 = pnand %p1571_p3, %p1559_p0  ;;  %p1579_p7 = scmp.lt.s32.totalorder %s1577_s27, %s1570_s30 }
  0x45   : > { %p1574_p13 = pneg %p1573_p9  ;;  %p1580_p4 = por %p1579_p7, %p1578_p5 }
  0x47   : > { %p1581_p8 = pnand %p1580_p4, %p1574_p13 }
  0x49   : > { %1584 = shalt.err (!%p1581_p8)
}
  0x4a   : > { %s2357_s23 = smov 64   ;;  %p2358_p0 = scmp.ne.s32.totalorder %s2352_s26, 0 }
  0x4b   : > { %1345 = dma.hbm_to_vmem [thread:$0]  (!%p1798_p11), %s1794_s10, 512, %s1796_s12, %s1802_s16, %s2357_s23, %s2357_s23, %s1660_s14  }
  0x4c   : > { %231 = sbr.rel (%p2358_p0) target bundleno = 663 (0x297), region = 40 }
  0x51   : > { %s1829_s6 = sand.u32 1, %s1645_s19   ;;  %p2359_p4 = scmp.ne.s32.totalorder %s2350_s24, 0 }
  0x52   : > { %s1235_s13 = sshll.u32 %s1829_s6, 5  ;;  %s234_s7 = scalar_lea.sflag [#allocation3], %s1829_s6 }
  0x53   : > { %s1833_s8 = scalar_lea.vmem [#allocation2], %s1235_s13 }
  0x54   : > { %1628 = dma.done.wait (%p2359_p4), %s234_s7, 512  }
  0x55   : > { %1630 = vsyncadd (%p2359_p4), %s234_s7, 4294966784  ;;  %p2360_p8 = scmp.eq.s32.totalorder %s1717_s22, 0 }
  0x57   : > { %1632 = dma.done.wait (%p2360_p8), [#allocation6], 4096   ;;  %p2361_p7 = pmov %p2360_p8 }
  0x58   : > { %v1662_v0 = vmov 0   ;;  %v1397_v1 = vld [vmem:[#allocation5 + $0x74] ss:$8 sps:$4 sm:$0xff]   ;;  %v1399_v2 = vld [vmem:[#allocation5 + $0x70] ss:$8 sps:$4 sm:$0xff]   ;;  %v1421_v17 = vld [vmem:[%s1833_s8] sm:$0xff]   ;;  %v301_v37 = vlaneseq }
  0x59   : > { %1634 = vsyncadd (%p2361_p7), [#allocation6], 4294963200  ;;  %447 = vmatprep.mubr.bf16.mxu0 %v1662_v0  ;;  %415 = vmatprep.subr.bf16.mxu0 %v1397_v1  ;;  %v1400_v3 = vld [vmem:[#allocation5 + $0x64] ss:$8 sps:$4 sm:$0xff]   ;;  %v1402_v4 = vld [vmem:[#allocation5 + $0x60] ss:$8 sps:$4 sm:$0xff]  }
  0x5a   : > { %416 = vmatpush1.bf16.msra.mxu0 %v1399_v2  ;;  %v1403_v5 = vld [vmem:[#allocation5 + $0x54] ss:$8 sps:$4 sm:$0xff]   ;;  %v1405_v6 = vld [vmem:[#allocation5 + $0x50] ss:$8 sps:$4 sm:$0xff]   ;;  %v1406_v7 = vld [vmem:[#allocation5 + $0x44] ss:$8 sps:$4 sm:$0xff]  }
  0x5b   : > { %417 = vmatprep.subr.bf16.mxu0 %v1400_v3  ;;  %v1408_v8 = vld [vmem:[#allocation5 + $0x40] ss:$8 sps:$4 sm:$0xff]   ;;  %v1409_v9 = vld [vmem:[#allocation5 + $0x34] ss:$8 sps:$4 sm:$0xff]   ;;  %v1411_v10 = vld [vmem:[#allocation5 + $0x30] ss:$8 sps:$4 sm:$0xff]  }
  0x5c   : > { %v1412_v11 = vld [vmem:[#allocation5 + $0x24] ss:$8 sps:$4 sm:$0xff]   ;;  %v1414_v12 = vld [vmem:[#allocation5 + $0x20] ss:$8 sps:$4 sm:$0xff]   ;;  %v1415_v13 = vld [vmem:[#allocation5 + $0x14] ss:$8 sps:$4 sm:$0xff]  }
  0x5d   : > { %v1417_v14 = vld [vmem:[#allocation5 + $0x10] ss:$8 sps:$4 sm:$0xff]   ;;  %v1418_v15 = vld [vmem:[#allocation5 + $0x4] ss:$8 sps:$4 sm:$0xff]   ;;  %v1420_v16 = vld [vmem:[#allocation5] ss:$8 sps:$4 sm:$0xff]  }
  0x5e   : > { %418 = vmatpush1.bf16.msra.mxu0 %v1402_v4  ;;  %v1422_v18 = vld [vmem:[%s1833_s8 + $0x8] sm:$0xff]   ;;  %v1423_v19 = vld [vmem:[%s1833_s8 + $0x10] sm:$0xff]   ;;  %v1424_v20 = vld [vmem:[%s1833_s8 + $0x18] sm:$0xff]   ;;  %v302_v38 = vshrl.u32 %v301_v37, 7  ;;  %s1238_s14 = sshll.u32 %s1829_s6, 6  ;;  %s1282_s9 = sshll.u32 %s1717_s22, 10 }
  0x5f   : > { %419 = vmatprep.subr.bf16.mxu0 %v1403_v5  ;;  %v1425_v21 = vld [vmem:[#allocation7 + $0x78] sm:$0xff]   ;;  %v1427_v23 = vld [vmem:[#allocation7 + $0x70] sm:$0xff]   ;;  %v1429_v25 = vld [vmem:[#allocation7 + $0x68] sm:$0xff]   ;;  %s2268_s15 = scalar_lea.vmem [#allocation8], %s1238_s14  ;;  %s2284_s27 = scalar_lea.hbm %s2333_s5, %s1282_s9 }
  0x60   : > { %v1426_v22 = vld [vmem:[#allocation7 + $0x38] sm:$0xff]   ;;  %1283 = vmatprep.subr.bf16.mxu1 %v1425_v21  ;;  %v1428_v24 = vld [vmem:[#allocation7 + $0x30] sm:$0xff]   ;;  %v1430_v26 = vld [vmem:[#allocation7 + $0x28] sm:$0xff]   ;;  %v303_v39 = vsub.s32 0, %v302_v38  ;;  %v307_v51 = vsub.s32 1, %v302_v38  ;;  %s1134_s16 = sshll.u32 %s2268_s15, 4  ;;  %s2278_s16 = int_to_ptr.vmem [resolvable:$true] %s1134_s16 }
  0x61   : > { %1284 = vmatpush3.bf16.msra.mxu1 %v1426_v22  ;;  %v1431_v27 = vld [vmem:[#allocation7 + $0x60] sm:$0xff]   ;;  %v1433_v29 = vld [vmem:[#allocation7 + $0x58] sm:$0xff]   ;;  %v1435_v31 = vld [vmem:[#allocation7 + $0x50] sm:$0xff]   ;;  %s1121_s23 = scalar_lea.sflag [#allocation4], %s1829_s6  ;;  %s1585_s13 = scalar_lea.vmem %s2278_s16, 1024 }
  0x62   : > { %420 = vmatpush1.bf16.msra.mxu0 %v1405_v6  ;;  %1285 = vmatprep.subr.bf16.mxu1 %v1427_v23  ;;  %v1432_v28 = vld [vmem:[#allocation7 + $0x20] sm:$0xff]   ;;  %v1434_v30 = vld [vmem:[#allocation7 + $0x18] sm:$0xff]   ;;  %v1436_v32 = vld [vmem:[#allocation7 + $0x10] sm:$0xff]   ;;  %p1586_p11 = scmp.ne.s32.totalorder %s2278_s16, %s1585_s13  ;;  %p2383_p10 = scmp.ne.s32.totalorder %s2355_s29, 0 }
  0x63   : > { %421 = vmatprep.subr.bf16.mxu0 %v1406_v7  ;;  %v1437_v33 = vld [vmem:[#allocation7 + $0x48] sm:$0xff]   ;;  %v1439_v35 = vld [vmem:[#allocation7 + $0x40] sm:$0xff]   ;;  %s1663_s22 = smov [#allocation8]  }
  0x64   : > { %v1438_v34 = vld [vmem:[#allocation7 + $0x8] sm:$0xff]   ;;  %v1440_v36 = vld [vmem:[#allocation7] sm:$0xff]   ;;  %p1587_p1 = pnand %p1586_p11, %p2383_p10  ;;  %s1589_s7 = sshll.u32 %s1663_s22, 4  ;;  %s1590_s7 = int_to_ptr.vmem [resolvable:$false] %s1589_s7 }
  0x65   : > { %1286 = vmatpush3.bf16.msra.mxu1 %v1428_v24  ;;  %v299_v40 = vld [vmem:[%s2330_s2] sm:$0x3]  ;;  %s1591_s8 = scalar_lea.vmem %s1590_s7, 2048  ;;  %p1592_p6 = scmp.lt.s32.totalorder %s2278_s16, %s1590_s7 }
  0x66   : > { %422 = vmatpush1.bf16.msra.mxu0 %v1408_v8  ;;  %1287 = vmatprep.subr.bf16.mxu1 %v1429_v25  ;;  %v1850_v41 = vrot.slane %v299_v40, %v303_v39  ;;  %v1871_v57 = vrot.slane %v299_v40, %v307_v51  ;;  %p1588_p2 = pneg %p1587_p1  ;;  %p1593_p12 = scmp.lt.s32.totalorder %s1591_s8, %s1585_s13 }
  0x67   : > { %423 = vmatprep.subr.bf16.mxu0 %v1409_v9 }
  0x68   : > { %p1594_p3 = por %p1593_p12, %p1592_p6 }
  0x69   : > { %1288 = vmatpush3.bf16.msra.mxu1 %v1430_v26 }
  0x6a   : > { %424 = vmatpush1.bf16.msra.mxu0 %v1411_v10  ;;  %1289 = vmatprep.subr.bf16.mxu1 %v1431_v27  ;;  %p1595_p9 = pnand %p1594_p3, %p1588_p2 }
  0x6b   : > { %425 = vmatprep.subr.bf16.mxu0 %v1412_v11 }
  0x6d   : > { %1290 = vmatpush3.bf16.msra.mxu1 %v1432_v28 }
  0x6e   : > { %426 = vmatpush1.bf16.msra.mxu0 %v1414_v12  ;;  %1291 = vmatprep.subr.bf16.mxu1 %v1433_v29 }
  0x6f   : > { %427 = vmatprep.subr.bf16.mxu0 %v1415_v13 }
  0x71   : > { %1292 = vmatpush3.bf16.msra.mxu1 %v1434_v30 }
  0x72   : > { %428 = vmatpush1.bf16.msra.mxu0 %v1417_v14  ;;  %1293 = vmatprep.subr.bf16.mxu1 %v1435_v31 }
  0x73   : > { %429 = vmatprep.subr.bf16.mxu0 %v1418_v15 }
  0x75   : > { %1294 = vmatpush3.bf16.msra.mxu1 %v1436_v32 }
  0x76   : > { %430 = vmatpush1.bf16.msra.mxu0 %v1420_v16  ;;  %1295 = vmatprep.subr.bf16.mxu1 %v1437_v33 }
  0x79   : > { %448 = vmatmul.mubr.bf16.vlgmr.msra.gmra.mxu0 %v1421_v17  ;;  %1296 = vmatpush3.bf16.msra.mxu1 %v1438_v34 }
  0x7a   : > { %457 = vmatprep.mubr.bf16.mxu0 %v1662_v0  ;;  %1297 = vmatprep.subr.bf16.mxu1 %v1439_v35 }
  0x7d   : > { %1298 = vmatpush3.bf16.msra.mxu1 %v1440_v36 }
  0x81   : > { %458 = vmatmul.mubr.bf16.gmra.mxu0 %v1422_v18 }
  0x82   : > { %467 = vmatprep.mubr.bf16.mxu0 %v1662_v0 }
  0x89   : > { %468 = vmatmul.mubr.bf16.gmra.mxu0 %v1423_v19 }
  0x8a   : > { %477 = vmatprep.mubr.bf16.mxu0 %v1662_v0 }
  0x91   : > { %478 = vmatmul.mubr.bf16.gmra.mxu0 %v1424_v20 }
 0x139   : > { %v449_v42 = vpop.f32.mrf.mxu0 }
 0x13a   : > { %v1853_v43 = vadd.f32 %v449_v42, %v1850_v41 }
 0x13b   : > { %v451_v44 = vpop.f32.mrf.mxu0 }
 0x13c   : > { %v1856_v45 = vmul.f32 0.70710677, %v1853_v43  ;;  %v452_v20 = vadd.f32 %v451_v44, %v1871_v57 }
 0x13d   : > { %v453_v46 = vpop.f32.mrf.mxu0 }
 0x13e   : > { %v1859_v47 = vand.u32 2147483647, %v1856_v45  ;;  %v1862_v48 = vadd.f32 %v453_v46, %v1850_v41  ;;  %v1927_v29 = vmul.f32 0.70710677, %v452_v20  ;;  %vm808_vm0 = vcmp.lt.f32.partialorder %v1856_v45, 0.0 }
 0x13f   : > { %v1864_v49 = vpop.f32.mrf.mxu0 }
 0x140   : > { %v520_v50 = vmul.f32 0.3275911, %v1859_v47  ;;  %v1868_v52 = vmul.f32 0.70710677, %v1862_v48  ;;  %v712_v31 = vsub.f32 0.0, %v1859_v47  ;;  %v1943_v44 = vadd.f32 %v1864_v49, %v1871_v57 }
 0x141   : > { %v459_v53 = vpop.f32.mrf.mxu0  ;;  %v505_v37 = vand.u32 2147483647, %v1927_v29  ;;  %vm809_vm5 = vcmp.lt.f32.partialorder %v1927_v29, 0.0 }
 0x142   : > { %v536_v54 = vadd.f32 1.0, %v520_v50  ;;  %v506_v55 = vand.u32 2147483647, %v1868_v52  ;;  %v1874_v59 = vadd.f32 %v459_v53, %v1850_v41  ;;  %v728_v42 = vmul.f32 %v712_v31, %v1859_v47 }
 0x143   : > { %v461_v56 = vpop.f32.mrf.mxu0  ;;  %vm810_vm1 = vcmp.lt.f32.partialorder %v1868_v52, 0.0 }
 0x144   : > { %1441 = vrcp.f32 %v536_v54  ;;  %v522_v58 = vmul.f32 0.3275911, %v506_v55  ;;  %v1877_v60 = vadd.f32 %v461_v56, %v1871_v57  ;;  %v1880_v63 = vmul.f32 0.70710677, %v1874_v59 }
 0x145   : > { %v463_v62 = vpop.f32.mrf.mxu0  ;;  %v714_v34 = vsub.f32 0.0, %v506_v55 }
 0x146   : > { %v538_v61 = vadd.f32 1.0, %v522_v58  ;;  %v1883_v0 = vmul.f32 0.70710677, %v1877_v60  ;;  %v1886_v1 = vand.u32 2147483647, %v1880_v63  ;;  %v1892_v3 = vadd.f32 %v463_v62, %v1850_v41 }
 0x147   : > { %v465_v4 = vpop.f32.mrf.mxu0  ;;  %v730_v51 = vmul.f32 %v714_v34, %v506_v55  ;;  %v1963_v55 = vmul.f32 0.70710677, %v1943_v44  ;;  %vm812_vm2 = vcmp.lt.f32.partialorder %v1880_v63, 0.0 }
 0x148   : > { %1443 = vrcp.f32 %v538_v61  ;;  %v1889_v2 = vand.u32 2147483647, %v1883_v0  ;;  %v524_v5 = vmul.f32 0.3275911, %v1886_v1  ;;  %v1897_v7 = vmul.f32 0.70710677, %v1892_v3 }
 0x149   : > { %v1900_v9 = vadd.f32 %v465_v4, %v1871_v57  ;;  %v469_v12 = vpop.f32.mrf.mxu0  ;;  %v521_v61 = vmul.f32 0.3275911, %v505_v37  ;;  %v744_v4 = vmul.f32 1.442695, %v728_v42  ;;  %vm813_vm3 = vcmp.lt.f32.partialorder %v1883_v0, 0.0 }
 0x14a   : > { %v525_v6 = vmul.f32 0.3275911, %v1889_v2  ;;  %v540_v8 = vadd.f32 1.0, %v524_v5  ;;  %v1903_v11 = vand.u32 2147483647, %v1897_v7  ;;  %v1918_v23 = vadd.f32 %v469_v12, %v1850_v41 }
 0x14b   : > { %v1906_v13 = vmul.f32 0.70710677, %v1900_v9  ;;  %v471_v18 = vpop.f32.mrf.mxu0  ;;  %vm811_vm6 = vcmp.lt.f32.partialorder %v1963_v55, 0.0  ;;  %vm814_vm7 = vcmp.lt.f32.partialorder %v1897_v7, 0.0 }
 0x14c   : > { %v541_v10 = vadd.f32 1.0, %v525_v6  ;;  %1445 = vrcp.f32 %v540_v8  ;;  %v526_v15 = vmul.f32 0.3275911, %v1903_v11  ;;  %2362 = vst [vmem:[#allocation12_spill] sm:$0xff] %v1918_v23  ;;  %v1923_v26 = vadd.f32 %v471_v18, %v1871_v57 }
 0x14d   : > { %v1913_v17 = vand.u32 2147483647, %v1906_v13  ;;  %v473_v30 = vpop.f32.mrf.mxu0  ;;  %v1931_v33 = vmul.f32 0.70710677, %v1918_v23  ;;  %v748_v6 = vmul.f32 1.442695, %v730_v51 }
 0x14e   : > { %1447 = vrcp.f32 %v541_v10  ;;  %v542_v21 = vadd.f32 1.0, %v526_v15  ;;  %v1934_v35 = vmul.f32 0.70710677, %v1923_v26  ;;  %v1956_v58 = vadd.f32 %v473_v30, %v1850_v41 }
 0x14f   : > { %v527_v22 = vmul.f32 0.3275911, %v1913_v17  ;;  %2363 = vst [vmem:[#allocation13_spill] sm:$0xff] %v1931_v33  ;;  %v475_v39 = vpop.f32.mrf.mxu0  ;;  %v1946_v46 = vand.u32 2147483647, %v1931_v33  ;;  %v716_v51 = vsub.f32 0.0, %v1886_v1 }
 0x150   : > { %1449 = vrcp.f32 %v542_v21  ;;  %v1952_v54 = vand.u32 2147483647, %v1934_v35  ;;  %2364 = vst [vmem:[#allocation14_spill] sm:$0xff] %v1956_v58  ;;  %v1959_v47 = vadd.f32 %v475_v39, %v1871_v57  ;;  %v1968_v15 = vmul.f32 0.70710677, %v1956_v58 }
 0x151   : > { %v1908_v14 = vpop.eup %1441  ;;  %v543_v25 = vadd.f32 1.0, %v527_v22  ;;  %v528_v5 = vmul.f32 0.3275911, %v1946_v46  ;;  %vm815_vm4 = vcmp.lt.f32.partialorder %v1906_v13, 0.0  ;;  %vm817_vm9 = vcmp.lt.f32.partialorder %v1934_v35, 0.0 }
 0x152   : > { %v568_v16 = vmul.f32 1.0614054, %v1908_v14  ;;  %v529_v10 = vmul.f32 0.3275911, %v1952_v54  ;;  %v867_v35 = vmul.f32 0.5, %v1959_v47  ;;  %vm818_vm10 = vcmp.lt.f32.partialorder %v1968_v15, 0.0 }
 0x153   : > { %1451 = vrcp.f32 %v543_v25  ;;  %v537_v25 = vadd.f32 1.0, %v521_v61  ;;  %v544_v30 = vadd.f32 1.0, %v528_v5 }
 0x154   : > { %v584_v19 = vadd.f32 -1.4531521, %v568_v16  ;;  %v1971_v16 = vmul.f32 0.70710677, %v1959_v47  ;;  %1453 = vpow2.f32 %v744_v4 }
 0x155   : > { %v1920_v24 = vpop.eup %1443  ;;  %1455 = vpow2.f32 %v748_v6 }
 0x156   : > { %v570_v27 = vmul.f32 1.0614054, %v1920_v24  ;;  %v600_v28 = vmul.f32 %v1908_v14, %v584_v19  ;;  %v1974_v19 = vmul.f32 0.5, %v1853_v43  ;;  %v1990_v39 = vand.u32 2147483647, %v1971_v16 }
 0x157   : > { %1457 = vrcp.f32 %v544_v30  ;;  %vm819_vm8 = vcmp.lt.f32.partialorder %v1971_v16, 0.0 }
 0x158   : > { %v586_v32 = vadd.f32 -1.4531521, %v570_v27  ;;  %v616_v36 = vadd.f32 1.4214138, %v600_v28  ;;  %v713_v27 = vsub.f32 0.0, %v505_v37  ;;  %v1979_v28 = vmul.f32 0.5, %v452_v20 }
 0x159   : > { %v1938_v40 = vpop.eup %1445 }
 0x15a   : > { %v602_v38 = vmul.f32 %v1920_v24, %v586_v32  ;;  %v572_v53 = vmul.f32 1.0614054, %v1938_v40  ;;  %v632_v49 = vmul.f32 %v1908_v14, %v616_v36  ;;  %v507_v32 = vand.u32 2147483647, %v1963_v55 }
 0x15b   : > { %v1948_v50 = vpop.eup %1447  ;;  %v545_v36 = vadd.f32 1.0, %v529_v10  ;;  %v531_v10 = vmul.f32 0.3275911, %v1990_v39 }
 0x15c   : > { %v573_v56 = vmul.f32 1.0614054, %v1948_v50  ;;  %v618_v62 = vadd.f32 1.4214138, %v602_v38  ;;  %v588_v8 = vadd.f32 -1.4531521, %v572_v53 }
 0x15d   : > { %v648_v18 = vadd.f32 -0.28449672, %v632_v49  ;;  %v1977_v22 = vpop.eup %1449  ;;  %v1987_v38 = vand.u32 2147483647, %v1968_v15  ;;  %v717_v49 = vsub.f32 0.0, %v1889_v2  ;;  %v715_v4 = vsub.f32 0.0, %v507_v32 }
 0x15e   : > { %v589_v12 = vadd.f32 -1.4531521, %v573_v56  ;;  %v634_v21 = vmul.f32 %v1920_v24, %v618_v62  ;;  %v604_v34 = vmul.f32 %v1938_v40, %v588_v8  ;;  %v574_v53 = vmul.f32 1.0614054, %v1977_v22 }
 0x15f   : > { %v664_v20 = vmul.f32 %v1908_v14, %v648_v18  ;;  %v729_v56 = vmul.f32 %v713_v27, %v505_v37  ;;  %v1998_v62 = vmul.f32 0.5, %v1862_v48  ;;  %1459 = vrcp.f32 %v545_v36 }
 0x160   : > { %v1981_v31 = vpop.eup %1451  ;;  %v605_v43 = vmul.f32 %v1948_v50, %v589_v12  ;;  %v650_v42 = vadd.f32 -0.28449672, %v634_v21  ;;  %v620_v5 = vadd.f32 1.4214138, %v604_v34  ;;  %v530_v8 = vmul.f32 0.3275911, %v1987_v38 }
 0x161   : > { %v575_v61 = vmul.f32 1.0614054, %v1981_v31  ;;  %v680_v12 = vadd.f32 0.2548296, %v664_v20  ;;  %v732_v37 = vmul.f32 %v716_v51, %v1886_v1  ;;  %v590_v21 = vadd.f32 -1.4531521, %v574_v53 }
 0x162   : > { %v621_v6 = vadd.f32 1.4214138, %v605_v43  ;;  %v666_v18 = vmul.f32 %v1920_v24, %v650_v42  ;;  %1461 = vrcp.f32 %v537_v25  ;;  %v746_v27 = vmul.f32 1.442695, %v729_v56 }
 0x163   : > { %v733_v30 = vmul.f32 %v717_v49, %v1889_v2  ;;  %v591_v48 = vadd.f32 -1.4531521, %v575_v61  ;;  %v523_v23 = vmul.f32 0.3275911, %v507_v32  ;;  %v731_v58 = vmul.f32 %v715_v4, %v507_v32 }
 0x164   : > { %v636_v34 = vmul.f32 %v1938_v40, %v620_v5  ;;  %v718_v36 = vsub.f32 0.0, %v1903_v11  ;;  %v637_v43 = vmul.f32 %v1948_v50, %v621_v6  ;;  %v719_v20 = vsub.f32 0.0, %v1913_v17  ;;  %v1454_v6 = vpop.eup %1453 }
 0x165   : > { %v546_v33 = vadd.f32 1.0, %v530_v8  ;;  %v547_v42 = vadd.f32 1.0, %v531_v10  ;;  %v696_v1 = vmul.f32 %v1908_v14, %v680_v12  ;;  %v682_v51 = vadd.f32 0.2548296, %v666_v18  ;;  %v1456_v12 = vpop.eup %1455 }
 0x166   : > { %v752_v25 = vmul.f32 1.442695, %v732_v37  ;;  %v606_v53 = vmul.f32 %v1977_v22, %v590_v21  ;;  %v754_v2 = vmul.f32 1.442695, %v733_v30  ;;  %v607_v56 = vmul.f32 %v1981_v31, %v591_v48  ;;  %v479_v48 = vpop.f32.mrf.mxu0 }
 0x167   : > { %v720_v32 = vsub.f32 0.0, %v1946_v46  ;;  %1463 = vrcp.f32 %v547_v42  ;;  %v539_v49 = vadd.f32 1.0, %v523_v23  ;;  %v652_v61 = vadd.f32 -0.28449672, %v636_v34  ;;  %v2021_v34 = vpop.eup %1457 }
 0x168   : > { %v734_v4 = vmul.f32 %v718_v36, %v1903_v11  ;;  %v721_v5 = vsub.f32 0.0, %v1952_v54  ;;  %v750_v8 = vmul.f32 1.442695, %v731_v58  ;;  %v653_v10 = vadd.f32 -0.28449672, %v637_v43 }
 0x169   : > { %v735_v14 = vmul.f32 %v719_v20, %v1913_v17  ;;  %1465 = vrcp.f32 %v546_v33  ;;  %v776_v18 = vmul.f32 %v1454_v6, %v696_v1  ;;  %v698_v37 = vmul.f32 %v1920_v24, %v682_v51 }
 0x16a   : > { %1467 = vpow2.f32 %v752_v25  ;;  %v622_v21 = vadd.f32 1.4214138, %v606_v53  ;;  %v2018_v30 = vmul.f32 0.5, %v1943_v44  ;;  %v623_v23 = vadd.f32 1.4214138, %v607_v56  ;;  %v481_v25 = vpop.f32.mrf.mxu0 }
 0x16b   : > { %1469 = vpow2.f32 %v754_v2  ;;  %v736_v11 = vmul.f32 %v720_v32, %v1946_v46  ;;  %v668_v17 = vmul.f32 %v1938_v40, %v652_v61  ;;  %v756_v33 = vmul.f32 1.442695, %v734_v4 }
 0x16c   : > { %1471 = vpow2.f32 %v746_v27  ;;  %v737_v58 = vmul.f32 %v721_v5, %v1952_v54  ;;  %v2025_v36 = vpop.eup %1459  ;;  %v2029_v24 = vmul.f32 0.5, %v1874_v59  ;;  %v669_v44 = vmul.f32 %v1948_v50, %v653_v10 }
 0x16d   : > { %1473 = vrcp.f32 %v539_v49  ;;  %v758_v46 = vmul.f32 1.442695, %v735_v14  ;;  %v792_v43 = vsub.f32 1.0, %v776_v18  ;;  %v778_v20 = vmul.f32 %v1456_v12, %v698_v37 }
 0x16e   : > { %1475 = vpow2.f32 %v750_v8  ;;  %v638_v27 = vmul.f32 %v1977_v22, %v622_v21  ;;  %v639_v42 = vmul.f32 %v1981_v31, %v623_v23  ;;  %v576_v54 = vmul.f32 1.0614054, %v2021_v34 }
 0x16f   : > { %v760_v1 = vmul.f32 1.442695, %v736_v11  ;;  %v2036_v51 = vadd.f32 %v479_v48, %v1850_v41  ;;  %v2038_v53 = vpop.eup %1461  ;;  %v684_v59 = vadd.f32 0.2548296, %v668_v17  ;;  %1477 = vpow2.f32 %v756_v33 }
 0x170   : > { %v577_v2 = vmul.f32 1.0614054, %v2025_v36  ;;  %v762_v56 = vmul.f32 1.442695, %v737_v58  ;;  %v685_v32 = vadd.f32 0.2548296, %v669_v44  ;;  %1479 = vpow2.f32 %v758_v46 }
 0x171   : > { %2365 = vst [vmem:[#allocation15_spill] sm:$0xff] %v2036_v51  ;;  %v2043_v49 = vmul.f32 0.5, %v1877_v60  ;;  %v722_v61 = vsub.f32 0.0, %v1987_v38  ;;  %v824_v4 = vsub.f32 0.0, %v792_v43  ;;  %v794_v5 = vsub.f32 1.0, %v778_v20 }
 0x172   : > { %v654_v6 = vadd.f32 -0.28449672, %v638_v27  ;;  %v2047_v8 = vadd.f32 %v481_v25, %v1871_v57  ;;  %v655_v10 = vadd.f32 -0.28449672, %v639_v42  ;;  %v592_v14 = vadd.f32 -1.4531521, %v576_v54 }
 0x173   : > { %1481 = vpow2.f32 %v760_v1  ;;  %v2050_v12 = vmul.f32 0.70710677, %v2036_v51  ;;  %v700_v60 = vmul.f32 %v1938_v40, %v684_v59  ;;  %v2056_v37 = vmul.f32 0.5, %v1900_v9 }
 0x174   : > { %2366 = vst [vmem:[#allocation16_spill] sm:$0xff] %v2047_v8  ;;  %v2052_v18 = vpop.eup %1463  ;;  %v593_v21 = vadd.f32 -1.4531521, %v577_v2  ;;  %1483 = vpow2.f32 %v762_v56  ;;  %v701_v23 = vmul.f32 %v1948_v50, %v685_v32  ;;  %v738_v11 = vmul.f32 %v722_v61, %v1987_v38  ;;  %v483_v61 = vpop.f32.mrf.mxu0 }
 0x175   : > { %2367 = vst [vmem:[#allocation17_spill] sm:$0xff] %v2050_v12  ;;  %v579_v48 = vmul.f32 1.0614054, %v2052_v18  ;;  %v2062_v17 = vand.u32 2147483647, %v2050_v12  ;;  %v840_v58 = vsel %vm808_vm0, %v824_v4, %v792_v43  ;;  %v826_v40 = vsub.f32 0.0, %v794_v5 }
 0x176   : > { %v2064_v33 = vpop.eup %1465  ;;  %v670_v9 = vmul.f32 %v1977_v22, %v654_v6  ;;  %v2070_v44 = vmul.f32 0.70710677, %v2047_v8  ;;  %v671_v50 = vmul.f32 %v1981_v31, %v655_v10  ;;  %v608_v38 = vmul.f32 %v2021_v34, %v592_v14 }
 0x177   : > { %v1468_v46 = vpop.eup %1467  ;;  %v595_v20 = vadd.f32 -1.4531521, %v579_v48  ;;  %v532_v27 = vmul.f32 0.3275911, %v2062_v17  ;;  %v609_v45 = vmul.f32 %v2025_v36, %v593_v21  ;;  %v723_v43 = vsub.f32 0.0, %v1990_v39 }
 0x178   : > { %v1470_v42 = vpop.eup %1469  ;;  %v2075_v54 = vmul.f32 %v1468_v46, %v700_v60  ;;  %v2080_v1 = vand.u32 2147483647, %v2070_v44  ;;  %v578_v2 = vmul.f32 1.0614054, %v2064_v33  ;;  %v842_v6 = vsel %vm810_vm1, %v826_v40, %v794_v5 }
 0x179   : > { %v2082_v25 = vpop.eup %1471  ;;  %v2084_v59 = vmul.f32 %v1470_v42, %v701_v23  ;;  %v611_v56 = vmul.f32 %v2052_v18, %v595_v20  ;;  %v548_v32 = vadd.f32 1.0, %v532_v27  ;;  %v686_v10 = vadd.f32 0.2548296, %v670_v9  ;;  %v485_v9 = vpop.f32.mrf.mxu0 }
 0x17a   : > { %v2088_v4 = vpop.eup %1473  ;;  %v764_v14 = vmul.f32 1.442695, %v738_v11  ;;  %v533_v60 = vmul.f32 0.3275911, %v2080_v1  ;;  %v687_v48 = vadd.f32 0.2548296, %v671_v50  ;;  %v739_v27 = vmul.f32 %v723_v43, %v1990_v39 }
 0x17b   : > { %v2093_v21 = vpop.eup %1475  ;;  %v624_v23 = vadd.f32 1.4214138, %v608_v38  ;;  %v627_v46 = vadd.f32 1.4214138, %v611_v56  ;;  %1485 = vrcp.f32 %v548_v32  ;;  %v872_v42 = vadd.f32 1.0, %v840_v58 }
 0x17c   : > { %v625_v20 = vadd.f32 1.4214138, %v609_v45  ;;  %v549_v51 = vadd.f32 1.0, %v533_v60  ;;  %v1478_v12 = vpop.eup %1477  ;;  %v796_v52 = vsub.f32 1.0, %v2075_v54  ;;  %v797_v5 = vsub.f32 1.0, %v2084_v59 }
 0x17d   : > { %v594_v11 = vadd.f32 -1.4531521, %v578_v2  ;;  %v2101_v40 = vadd.f32 %v483_v61, %v1850_v41  ;;  %v1480_v50 = vpop.eup %1479  ;;  %v874_v58 = vadd.f32 1.0, %v842_v6  ;;  %v702_v38 = vmul.f32 %v1977_v22, %v686_v10 }
 0x17e   : > { %1487 = vpow2.f32 %v764_v14  ;;  %v643_v39 = vmul.f32 %v2052_v18, %v627_v46  ;;  %v703_v45 = vmul.f32 %v1981_v31, %v687_v48  ;;  %v640_v54 = vmul.f32 %v2021_v34, %v624_v23 }
 0x17f   : > { %2368 = vst [vmem:[#allocation18_spill] sm:$0xff] %v2101_v40  ;;  %1489 = vrcp.f32 %v549_v51  ;;  %v2108_v43 = vmul.f32 0.70710677, %v2101_v40  ;;  %v2113_v41 = vmul.f32 %v872_v42, %v1974_v19  ;;  %v641_v2 = vmul.f32 %v2025_v36, %v625_v20 }
 0x180   : > { %v2110_v59 = vpop.eup %1481  ;;  %v766_v56 = vmul.f32 1.442695, %v739_v27  ;;  %v2117_v22 = vadd.f32 %v485_v9, %v1871_v57  ;;  %v828_v31 = vsub.f32 0.0, %v796_v52  ;;  %v829_v61 = vsub.f32 0.0, %v797_v5 }
 0x181   : > { %2369 = vst [vmem:[#allocation19_spill] sm:$0xff] %v2108_v43  ;;  %v2119_v32 = vpop.eup %1483  ;;  %v610_v51 = vmul.f32 %v2064_v33, %v594_v11  ;;  %v2123_v6 = vand.u32 2147483647, %v2108_v43  ;;  %v2126_v10 = vmul.f32 %v874_v58, %v1998_v62  ;;  %v659_v19 = vadd.f32 -0.28449672, %v643_v39 }
 0x182   : > { %2370 = vst [vmem:[#allocation20_spill] sm:$0xff] %v2117_v22  ;;  %v2129_v14 = vmul.f32 0.70710677, %v2117_v22  ;;  %v569_v60 = vmul.f32 1.0614054, %v2038_v53  ;;  %v2132_v57 = vmul.f32 %v1478_v12, %v702_v38  ;;  %v783_v48 = vmul.f32 %v1480_v50, %v703_v45 }
 0x183   : > { %v656_v23 = vadd.f32 -0.28449672, %v640_v54  ;;  %v534_v46 = vmul.f32 0.3275911, %v2123_v6  ;;  %v657_v42 = vadd.f32 -0.28449672, %v641_v2  ;;  %1491 = vpow2.f32 %v766_v56 }
 0x184   : > { %2371 = vst [vmem:[#allocation21_spill] sm:$0xff] %v2129_v14  ;;  %v2136_v20 = vand.u32 2147483647, %v2129_v14  ;;  %v571_v62 = vmul.f32 1.0614054, %v2088_v4  ;;  %v2141_v27 = vsel %vm812_vm2, %v828_v31, %v796_v52  ;;  %v725_v9 = vsub.f32 0.0, %v2080_v1 }
 0x185   : > { %v626_v11 = vadd.f32 1.4214138, %v610_v51  ;;  %v550_v12 = vadd.f32 1.0, %v534_v46  ;;  %v845_v50 = vsel %vm813_vm3, %v829_v61, %v797_v5  ;;  %v675_v58 = vmul.f32 %v2052_v18, %v659_v19 }
 0x186   : > { %v535_v38 = vmul.f32 0.3275911, %v2136_v20  ;;  %v585_v39 = vadd.f32 -1.4531521, %v569_v60  ;;  %v2344_v45 = vsub.f32 1.0, %v2132_v57  ;;  %v799_v54 = vsub.f32 1.0, %v783_v48 }
 0x187   : > { %v672_v63 = vmul.f32 %v2021_v34, %v656_v23  ;;  %1493 = vrcp.f32 %v550_v12  ;;  %v673_v2 = vmul.f32 %v2025_v36, %v657_v42  ;;  %v587_v0 = vadd.f32 -1.4531521, %v571_v62 }
 0x188   : > { %v2151_v52 = vpop.eup %1485  ;;  %v551_v56 = vadd.f32 1.0, %v535_v38  ;;  %v601_v5 = vmul.f32 %v2038_v53, %v585_v39  ;;  %v2155_v31 = vadd.f32 1.0, %v845_v50  ;;  %v642_v61 = vmul.f32 %v2064_v33, %v626_v11 }
 0x189   : > { %v580_v51 = vmul.f32 1.0614054, %v2151_v52  ;;  %v741_v19 = vmul.f32 %v725_v9, %v2080_v1  ;;  %v691_v60 = vadd.f32 0.2548296, %v675_v58  ;;  %v603_v48 = vmul.f32 %v2088_v4, %v587_v0 }
 0x18a   : > { %1495 = vrcp.f32 %v551_v56  ;;  %v617_v23 = vadd.f32 1.4214138, %v601_v5  ;;  %v2165_v42 = vsub.f32 0.0, %v2344_v45  ;;  %v688_v62 = vadd.f32 0.2548296, %v672_v63 }
 0x18b   : > { %v2161_v46 = vpop.eup %1487  ;;  %v596_v12 = vadd.f32 -1.4531521, %v580_v51  ;;  %v724_v50 = vsub.f32 0.0, %v2062_v17  ;;  %v831_v38 = vsub.f32 0.0, %v799_v54  ;;  %v689_v39 = vadd.f32 0.2548296, %v673_v2 }
 0x18c   : > { %v2168_v11 = vpop.eup %1489  ;;  %v619_v1 = vadd.f32 1.4214138, %v603_v48  ;;  %v633_v9 = vmul.f32 %v2038_v53, %v617_v23  ;;  %v658_v58 = vadd.f32 -0.28449672, %v642_v61  ;;  %v726_v5 = vsub.f32 0.0, %v2123_v6 }
 0x18d   : > { %v612_v56 = vmul.f32 %v2151_v52, %v596_v12  ;;  %v581_v0 = vmul.f32 1.0614054, %v2168_v11  ;;  %v707_v45 = vmul.f32 %v2052_v18, %v691_v60  ;;  %v770_v63 = vmul.f32 1.442695, %v741_v19 }
 0x18e   : > { %v635_v51 = vmul.f32 %v2088_v4, %v619_v1  ;;  %v649_v40 = vadd.f32 -0.28449672, %v633_v9  ;;  %v704_v22 = vmul.f32 %v2021_v34, %v688_v62  ;;  %v740_v2 = vmul.f32 %v724_v50, %v2062_v17 }
 0x18f   : > { %v628_v8 = vadd.f32 1.4214138, %v612_v56  ;;  %v597_v48 = vadd.f32 -1.4531521, %v581_v0  ;;  %v847_v61 = vsel %vm815_vm4, %v831_v38, %v799_v54  ;;  %v727_v23 = vsub.f32 0.0, %v2136_v20 }
 0x190   : > { %v651_v12 = vadd.f32 -0.28449672, %v635_v51  ;;  %v665_v43 = vmul.f32 %v2038_v53, %v649_v40  ;;  %v1492_v14 = vpop.eup %1491  ;;  %v705_v18 = vmul.f32 %v2025_v36, %v689_v39  ;;  %v674_v19 = vmul.f32 %v2064_v33, %v658_v58 }
 0x191   : > { %v613_v60 = vmul.f32 %v2168_v11, %v597_v48  ;;  %v742_v34 = vmul.f32 %v726_v5, %v2123_v6  ;;  %v2186_v62 = vmul.f32 %v1492_v14, %v707_v45  ;;  %1497 = vpow2.f32 %v770_v63 }
 0x192   : > { %v667_v13 = vmul.f32 %v2088_v4, %v651_v12  ;;  %v681_v17 = vadd.f32 0.2548296, %v665_v43  ;;  %v2191_v54 = vmul.f32 %v2110_v59, %v704_v22  ;;  %v644_v40 = vmul.f32 %v2151_v52, %v628_v8 }
 0x193   : > { %v768_v36 = vmul.f32 1.442695, %v740_v2  ;;  %v629_v50 = vadd.f32 1.4214138, %v613_v60  ;;  %v879_v39 = vadd.f32 1.0, %v847_v61  ;;  %v743_v6 = vmul.f32 %v727_v23, %v2136_v20 }
 0x194   : > { %v2194_v38 = vpop.eup %1493  ;;  %v683_v14 = vadd.f32 0.2548296, %v667_v13  ;;  %v697_v45 = vmul.f32 %v2038_v53, %v681_v17  ;;  %v690_v43 = vadd.f32 0.2548296, %v674_v19  ;;  %v772_v22 = vmul.f32 1.442695, %v742_v34 }
 0x195   : > { %v645_v1 = vmul.f32 %v2168_v11, %v629_v50  ;;  %v582_v59 = vmul.f32 1.0614054, %v2194_v38  ;;  %v785_v8 = vmul.f32 %v2119_v32, %v705_v18  ;;  %v803_v9 = vsub.f32 1.0, %v2186_v62 }
 0x196   : > { %v699_v58 = vmul.f32 %v2088_v4, %v683_v14  ;;  %v777_v56 = vmul.f32 %v2082_v25, %v697_v45  ;;  %v660_v53 = vadd.f32 -0.28449672, %v644_v40  ;;  %1499 = vpow2.f32 %v768_v36 }
 0x197   : > { %v2205_v20 = vpop.eup %1495  ;;  %v661_v0 = vadd.f32 -0.28449672, %v645_v1  ;;  %v598_v5 = vadd.f32 -1.4531521, %v582_v59  ;;  %v774_v51 = vmul.f32 1.442695, %v743_v6  ;;  %v706_v25 = vmul.f32 %v2064_v33, %v690_v43 }
 0x198   : > { %v583_v63 = vmul.f32 1.0614054, %v2205_v20  ;;  %v779_v32 = vmul.f32 %v2093_v21, %v699_v58  ;;  %v793_v2 = vsub.f32 1.0, %v777_v56  ;;  %1501 = vpow2.f32 %v772_v22 }
 0x199   : > { %v677_v4 = vmul.f32 %v2168_v11, %v661_v0  ;;  %v614_v48 = vmul.f32 %v2194_v38, %v598_v5  ;;  %v801_v61 = vsub.f32 1.0, %v785_v8  ;;  %v835_v19 = vsub.f32 0.0, %v803_v9 }
 0x19a   : > { %v599_v23 = vadd.f32 -1.4531521, %v583_v63  ;;  %v795_v12 = vsub.f32 1.0, %v779_v32  ;;  %v825_v18 = vsub.f32 0.0, %v793_v2  ;;  %v676_v60 = vmul.f32 %v2151_v52, %v660_v53 }
 0x19b   : > { %v693_v34 = vadd.f32 0.2548296, %v677_v4  ;;  %v630_v62 = vadd.f32 1.4214138, %v614_v48  ;;  %1503 = vpow2.f32 %v774_v51  ;;  %v786_v17 = vmul.f32 %v2161_v46, %v706_v25 }
 0x19c   : > { %v615_v21 = vmul.f32 %v2205_v20, %v599_v23  ;;  %v827_v13 = vsub.f32 0.0, %v795_v12  ;;  %v841_v33 = vsel %vm809_vm5, %v825_v18, %v793_v2  ;;  %v895_v6 = vmul.f32 %v879_v39, %v2056_v37 }
 0x19d   : > { %v709_v40 = vmul.f32 %v2168_v11, %v693_v34  ;;  %v646_v36 = vmul.f32 %v2194_v38, %v630_v62  ;;  %v873_v50 = vadd.f32 1.0, %v841_v33  ;;  %v833_v14 = vsub.f32 0.0, %v801_v61 }
 0x19e   : > { %v631_v45 = vadd.f32 1.4214138, %v615_v21  ;;  %v843_v43 = vsel %vm811_vm6, %v827_v13, %v795_v12  ;;  %v1498_v1 = vpop.eup %1497  ;;  %v893_v59 = vmul.f32 %v2155_v31, %v2043_v49  ;;  %v692_v29 = vadd.f32 0.2548296, %v676_v60 }
 0x19f   : > { %v662_v22 = vadd.f32 -0.28449672, %v646_v36  ;;  %v875_v8 = vadd.f32 1.0, %v843_v43  ;;  %v2372_v46 = vsub.f32 1.0, %v2132_v57  ;;  %v851_v37 = vsel %vm819_vm8, %v835_v19, %v803_v9 }
 0x1a0   : > { %v789_v39 = vmul.f32 %v1498_v1, %v709_v40  ;;  %v647_v55 = vmul.f32 %v2205_v20, %v631_v45  ;;  %v802_v58 = vsub.f32 1.0, %v786_v17  ;;  %v889_v49 = vmul.f32 %v873_v50, %v1979_v28 }
 0x1a1   : > { %v846_v11 = vsel %vm814_vm7, %v2165_v42, %v2372_v46  ;;  %v678_v56 = vmul.f32 %v2194_v38, %v662_v22  ;;  %v891_v31 = vmul.f32 %v875_v8, %v2018_v30  ;;  %v800_v53 = vsub.f32 1.0, %v2191_v54 }
 0x1a2   : > { %v849_v57 = vsel %vm817_vm9, %v833_v14, %v801_v61  ;;  %v663_v7 = vadd.f32 -0.28449672, %v647_v55  ;;  %v907_v42 = vpack.c.bf16 %v895_v6, %v893_v59  ;;  %v883_v0 = vadd.f32 1.0, %v851_v37  ;;  %v2374_v14 = vld [vmem:[#allocation14_spill] sm:$0xff]  ;;  %v2375_v59 = vld [vmem:[#allocation21_spill] sm:$0xff]  ;;  %v2379_v55 = vld [vmem:[#allocation20_spill] sm:$0xff] }
 0x1a3   : > { %v708_v16 = vmul.f32 %v2151_v52, %v692_v29  ;;  %v694_v9 = vadd.f32 0.2548296, %v678_v56  ;;  %v905_v5 = vpack.c.bf16 %v891_v31, %v889_v49  ;;  %v1500_v63 = vpop.eup %1499  ;;  %v878_v51 = vadd.f32 1.0, %v846_v11  ;;  %v2376_v29 = vld [vmem:[#allocation12_spill] sm:$0xff]  ;;  %v2380_v31 = vld [vmem:[#allocation17_spill] sm:$0xff] }
 0x1a4   : > { %v805_v32 = vsub.f32 1.0, %v789_v39  ;;  %v679_v2 = vmul.f32 %v2205_v20, %v663_v7  ;;  %v904_v28 = vpack.c.bf16 %v2126_v10, %v2113_v41  ;;  %v881_v30 = vadd.f32 1.0, %v849_v57  ;;  %v2378_v11 = vld [vmem:[#allocation16_spill] sm:$0xff] }
 0x1a5   : > { %v834_v54 = vsub.f32 0.0, %v802_v58  ;;  %v710_v25 = vmul.f32 %v2194_v38, %v694_v9  ;;  %1079 = vmatprep.mubr.bf16.mxu1 %v905_v5  ;;  %v1502_v4 = vpop.eup %1501  ;;  %v876_v52 = vadd.f32 1.0, %v2141_v27  ;;  %v862_v48 = vmul.f32 0.5, %v1892_v3  ;;  %v2381_v5 = vld [vmem:[#allocation18_spill] sm:$0xff] }
 0x1a6   : > { %v865_v61 = vmul.f32 0.5, %v1923_v26  ;;  %v695_v23 = vadd.f32 0.2548296, %v679_v2  ;;  %1080 = vmatmul.mubr.bf16.vlgmr.msra.gmra.mxu1 %v904_v28  ;;  %v832_v12 = vsub.f32 0.0, %v800_v53  ;;  %v899_v18 = vmul.f32 %v883_v0, %v867_v35  ;;  %v2373_v26 = vld [vmem:[#allocation13_spill] sm:$0xff] }
 0x1a7   : > { %v788_v19 = vmul.f32 %v1500_v63, %v708_v16  ;;  %v790_v41 = vmul.f32 %v1502_v4, %v710_v25  ;;  %1087 = vmatprep.mubr.bf16.mxu1 %v907_v42  ;;  %v894_v10 = vmul.f32 %v878_v51, %v862_v48  ;;  %v837_v47 = vsub.f32 0.0, %v805_v32  ;;  %v2382_v51 = vld [vmem:[#allocation15_spill] sm:$0xff]  ;;  %v1259_v35 = vld [vmem:[%s2332_s4] ss:$0 sm:$0xff] }
 0x1a8   : > { %v711_v38 = vmul.f32 %v2205_v20, %v695_v23  ;;  %v1504_v60 = vpop.eup %1503  ;;  %v897_v34 = vmul.f32 %v881_v30, %v865_v61  ;;  %v850_v27 = vsel %vm818_vm10, %v834_v54, %v802_v58  ;;  %v892_v3 = vmul.f32 %v876_v52, %v2029_v24 }
 0x1a9   : > { %v806_v62 = vsub.f32 1.0, %v790_v41  ;;  %vm816_vm11 = vcmp.lt.f32.partialorder %v2373_v26, 0.0  ;;  %v804_v33 = vsub.f32 1.0, %v788_v19  ;;  %vm821_vm12 = vcmp.lt.f32.partialorder %v2070_v44, 0.0  ;;  %v2377_v44 = vld [vmem:[#allocation19_spill] sm:$0xff] }
 0x1aa   : > { %v791_v21 = vmul.f32 %v1504_v60, %v711_v38  ;;  %v848_v13 = vsel %vm816_vm11, %v832_v12, %v800_v53  ;;  %v909_v17 = vpack.c.bf16 %v899_v18, %v897_v34  ;;  %v882_v40 = vadd.f32 1.0, %v850_v27 }
 0x1ab   : > { %v853_v36 = vsel %vm821_vm12, %v837_v47, %v805_v32  ;;  %v906_v50 = vpack.c.bf16 %v894_v10, %v892_v3  ;;  %v838_v6 = vsub.f32 0.0, %v806_v62  ;;  %v880_v20 = vadd.f32 1.0, %v848_v13 }
 0x1ac   : > { %v807_v15 = vsub.f32 1.0, %v791_v21  ;;  %v866_v45 = vmul.f32 0.5, %v2374_v14  ;;  %v836_v1 = vsub.f32 0.0, %v804_v33  ;;  %v885_v24 = vadd.f32 1.0, %v853_v36 }
 0x1ad   : > { %vm823_vm13 = vcmp.lt.f32.partialorder %v2375_v59, 0.0  ;;  %v864_v22 = vmul.f32 0.5, %v2376_v29  ;;  %vm822_vm14 = vcmp.lt.f32.partialorder %v2377_v44, 0.0  ;;  %v869_v37 = vmul.f32 0.5, %v2378_v11 }
 0x1ae   : > { %v839_v43 = vsub.f32 0.0, %v807_v15  ;;  %1088 = vmatmul.mubr.bf16.gmra.mxu1 %v906_v50  ;;  %v898_v8 = vmul.f32 %v882_v40, %v866_v45  ;;  %v854_v39 = vsel %vm822_vm14, %v838_v6, %v806_v62  ;;  %v871_v58 = vmul.f32 0.5, %v2379_v55 }
 0x1af   : > { %1095 = vmatprep.mubr.bf16.mxu1 %v909_v17  ;;  %v896_v49 = vmul.f32 %v880_v20, %v864_v22  ;;  %vm820_vm15 = vcmp.lt.f32.partialorder %v2380_v31, 0.0  ;;  %v901_v57 = vmul.f32 %v885_v24, %v869_v37  ;;  %v886_v42 = vadd.f32 1.0, %v854_v39 }
 0x1b0   : > { %v855_v46 = vsel %vm823_vm13, %v839_v43, %v807_v15  ;;  %v852_v53 = vsel %vm820_vm15, %v836_v1, %v804_v33  ;;  %v870_v63 = vmul.f32 0.5, %v2381_v5  ;;  %v868_v32 = vmul.f32 0.5, %v2382_v51 }
 0x1b1   : > { %v887_v56 = vadd.f32 1.0, %v855_v46  ;;  %v908_v0 = vpack.c.bf16 %v898_v8, %v896_v49  ;;  %v884_v9 = vadd.f32 1.0, %v852_v53 }
 0x1b2   : > { %v902_v2 = vmul.f32 %v886_v42, %v870_v63 }
 0x1b3   : > { %v903_v7 = vmul.f32 %v887_v56, %v871_v58  ;;  %v900_v28 = vmul.f32 %v884_v9, %v868_v32 }
 0x1b5   : > { %v911_v16 = vpack.c.bf16 %v903_v7, %v901_v57  ;;  %v910_v30 = vpack.c.bf16 %v902_v2, %v900_v28 }
 0x1b6   : > { %1096 = vmatmul.mubr.bf16.gmra.mxu1 %v908_v0 }
 0x1b7   : > { %1103 = vmatprep.mubr.bf16.mxu1 %v911_v16 }
 0x1be   : > { %1104 = vmatmul.mubr.bf16.gmra.mxu1 %v910_v30 }
 0x266   : > { %v1299_v54 = vpop.f32.mrf.mxu1 }
 0x268   : > { %v1300_v25 = vpop.f32.mrf.mxu1 }
 0x269   : > { %v1301_v4 = vadd.f32 %v1300_v25, %v1299_v54 }
 0x26a   : > { %v1302_v52 = vpop.f32.mrf.mxu1 }
 0x26b   : > { %v1082_v48 = vadd.f32 %v1301_v4, %v1259_v35 }
 0x26c   : > { %v1303_v61 = vpop.f32.mrf.mxu1 }
 0x26d   : > { %1112 = vst [vmem:[%s2268_s15] sm:$0xff] %v1082_v48  ;;  %v1304_v23 = vadd.f32 %v1303_v61, %v1302_v52 }
 0x26e   : > { %v1305_v12 = vpop.f32.mrf.mxu1 }
 0x26f   : > { %v1085_v18 = vadd.f32 %v1304_v23, %v1259_v35 }
 0x270   : > { %v1306_v19 = vpop.f32.mrf.mxu1 }
 0x271   : > { %1113 = vst [vmem:[%s2268_s15 + $0x8] sm:$0xff] %v1085_v18  ;;  %v1307_v41 = vadd.f32 %v1306_v19, %v1305_v12 }
 0x272   : > { %v1308_v10 = vpop.f32.mrf.mxu1 }
 0x273   : > { %v1090_v47 = vadd.f32 %v1307_v41, %v1259_v35 }
 0x274   : > { %v1309_v38 = vpop.f32.mrf.mxu1 }
 0x275   : > { %1114 = vst [vmem:[%s2268_s15 + $0x10] sm:$0xff] %v1090_v47  ;;  %v1310_v60 = vadd.f32 %v1309_v38, %v1308_v10 }
 0x276   : > { %v1311_v34 = vpop.f32.mrf.mxu1 }
 0x277   : > { %v1093_v27 = vadd.f32 %v1310_v60, %v1259_v35 }
 0x278   : > { %v1312_v62 = vpop.f32.mrf.mxu1 }
 0x279   : > { %1115 = vst [vmem:[%s2268_s15 + $0x18] sm:$0xff] %v1093_v27  ;;  %v1313_v3 = vadd.f32 %v1312_v62, %v1311_v34 }
 0x27a   : > { %v1314_v26 = vpop.f32.mrf.mxu1 }
 0x27b   : > { %v1098_v21 = vadd.f32 %v1313_v3, %v1259_v35 }
 0x27c   : > { %v1315_v13 = vpop.f32.mrf.mxu1 }
 0x27d   : > { %1116 = vst [vmem:[%s2268_s15 + $0x20] sm:$0xff] %v1098_v21  ;;  %v1316_v33 = vadd.f32 %v1315_v13, %v1314_v26 }
 0x27e   : > { %v1317_v17 = vpop.f32.mrf.mxu1 }
 0x27f   : > { %v1101_v40 = vadd.f32 %v1316_v33, %v1259_v35 }
 0x280   : > { %v1318_v36 = vpop.f32.mrf.mxu1 }
 0x281   : > { %1117 = vst [vmem:[%s2268_s15 + $0x28] sm:$0xff] %v1101_v40  ;;  %v1319_v15 = vadd.f32 %v1318_v36, %v1317_v17 }
 0x282   : > { %v1320_v50 = vpop.f32.mrf.mxu1 }
 0x283   : > { %v1106_v6 = vadd.f32 %v1319_v15, %v1259_v35 }
 0x284   : > { %v1321_v20 = vpop.f32.mrf.mxu1 }
 0x285   : > { %1118 = vst [vmem:[%s2268_s15 + $0x30] sm:$0xff] %v1106_v6  ;;  %v1322_v14 = vadd.f32 %v1321_v20, %v1320_v50 }
 0x287   : > { %v1109_v45 = vadd.f32 %v1322_v14, %v1259_v35 }
 0x289   : > { %1119 = vst [vmem:[%s2268_s15 + $0x38] sm:$0xff] %v1109_v45 }
 0x28a   : > { %1598 = shalt.err (!%p1595_p9)
}
 0x28b   : > { %s1599_s24 = scalar_lea.hbm %s2284_s27, 1024  ;;  %s1603_s10 = scalar_lea.hbm %s2333_s5, 2048 }
 0x28c   : > { %p1600_p13 = scmp.ne.s32.totalorder %s2284_s27, %s1599_s24  ;;  %p1604_p4 = scmp.lt.s32.totalorder %s2284_s27, %s2333_s5 }
 0x28d   : > { %p1605_p8 = scmp.lt.s32.totalorder %s1603_s10, %s1599_s24 }
 0x28e   : > { %p1601_p5 = pnand %p1600_p13, %p2383_p10 }
 0x28f   : > { %p1606_p7 = por %p1605_p8, %p1604_p4 }
 0x290   : > { %p1602_p0 = pneg %p1601_p5 }
 0x292   : > { %p1607_p11 = pnand %p1606_p7, %p1602_p0 }
 0x294   : > { %1610 = shalt.err (!%p1607_p11)
}
 0x295   : > { %s1664_s9 = smov 128   ;;  %s1665_s30 = smov 8  }
 0x296   : > { %1333 = dma.vmem_to_hbm [thread:$0]  (%p2383_p10), %s2278_s16, 1024, %s2284_s27, %s1121_s23, %s1664_s9, %s1664_s9, %s1665_s30  }
 0x297 PF: > { %s1149_s11 = sand.u32 1, %s1641_s18   ;;  %p2384_p1 = scmp.ne.s32.totalorder %s2351_s25, 0 }
 0x298   : > { %p2385_p2 = scmp.ge.s32.totalorder %s1653_s21, 2  ;;  %s1150_s13 = scalar_lea.sflag [#allocation4], %s1149_s11 }
 0x29a   : > { %p1347_p6 = pnand %p2385_p2, %p2384_p1 }
 0x29c   : > { %p1348_p12 = pneg %p1347_p6 }
 0x29e   : > { %1636 = dma.done.wait (%p1348_p12), %s1150_s13, 1024  }
 0x29f   : > { %1638 = vsyncadd (%p1348_p12), %s1150_s13, 4294966272  ;;  %p19_p3 = scmp.ge.s32.totalorder %s1771_s17, 4   ;;  %s2386_s18 = smov %s1645_s19 }
 0x2a0   : > { %s2387_s19 = smov %s1649_s20  ;;  %s2388_s20 = smov %s1780_s28 }
 0x2a1   : > { %s2389_s21 = smov %s1771_s17  ;;  %21 = sbr.rel (!%p19_p3) target bundleno = 6 (0x6), region = 93 }
 0x2a6   :  { %1155 = vsyncpa [#allocation3], 1 }
 0x2a7   :  { %1157 = vsyncpa [#allocation3 + $0x1], 1 }
 0x2a8   :  { %1158 = vsyncpa [#allocation6], 1 }
 0x2a9   :  { %1159 = vsyncpa [#allocation4], 1 }
 0x2aa   :  { %1161 = vsyncpa [#allocation4 + $0x1], 1 }

</bundles_post_ra>
